<compile_context>
chip_gen: v6e
topology: v6e:2x2x1
jax: 0.10.0
libtpu: 0.0.40
codegen_flags: <defaults>
</compile_context>

<pallas_src>
import functools

import jax
import jax.numpy as jnp
from jax.experimental import pallas as pl
from jax.experimental.pallas import tpu as pltpu


# ----------------------------- kernel bodies --------------------------------

def _packed_mlp(obs, w_ref, b_ref, *, obs_rows, width):
    """Agent-packed 3-layer MLP on the stacked bf16 weight slab.

    obs: (B, obs_rows) f32.  w_ref: (obs_rows + 2*width, width) bf16 with
    [W1; W2; W3] stacked along rows.  b_ref: (3, width) f32.
    Returns (B, width) f32 (lane-padded Q).
    """
    w1 = w_ref[0:obs_rows, :]
    w2 = w_ref[obs_rows:obs_rows + width, :]
    w3 = w_ref[obs_rows + width:obs_rows + 2 * width, :]
    b1 = b_ref[0:1, :]
    b2 = b_ref[1:2, :]
    b3 = b_ref[2:3, :]

    h1 = jnp.maximum(
        jnp.dot(obs.astype(jnp.bfloat16), w1,
                preferred_element_type=jnp.float32) + b1, 0.0)
    h2 = jnp.maximum(
        jnp.dot(h1.astype(jnp.bfloat16), w2,
                preferred_element_type=jnp.float32) + b2, 0.0)
    return jnp.dot(h2.astype(jnp.bfloat16), w3,
                   preferred_element_type=jnp.float32) + b3


def _qnet_fwd_kernel(obs_ref, w_ref, b_ref, q_ref, *, obs_rows, width):
    q = _packed_mlp(obs_ref[...], w_ref, b_ref, obs_rows=obs_rows, width=width)
    q_ref[...] = q.astype(q_ref.dtype)              # (B, WIDTH), lane-dense


def _qnet_act_kernel(obs_ref, w_ref, b_ref, act_ref, *,
                     obs_rows, width, n_agents, act_dim):
    q = _packed_mlp(obs_ref[...], w_ref, b_ref, obs_rows=obs_rows, width=width)
    bsz = q.shape[0]
    apad = act_ref.shape[1]                          # lane-padded (>=128)
    lane = jax.lax.broadcasted_iota(jnp.int32, (bsz, apad), 1)
    acts = jnp.zeros((bsz, apad), jnp.int32)
    # Fused greedy action selection: per-agent first-max argmax (VPU/XLU only).
    # TODO(synk): rows that are all-NaN would yield index act_dim (torch.argmax
    # returns the NaN index); irrelevant for healthy training.
    for a in range(n_agents):                        # static unroll, A is tiny
        qa = q[:, a * act_dim:(a + 1) * act_dim]     # (B, ACT)
        col = jax.lax.broadcasted_iota(jnp.int32, qa.shape, 1)
        row_max = jnp.max(qa, axis=-1, keepdims=True)
        idx = jnp.min(jnp.where(qa == row_max, col, act_dim),
                      axis=-1, keepdims=True)        # (B, 1) first maximal idx
        acts = jnp.where(lane == a, idx, acts)
    act_ref[...] = acts                              # ONE unmasked lane-dense store


# ----------------------------- wrappers --------------------------------------

_VMEM_SPEC = pl.BlockSpec(memory_space=pltpu.MemorySpace.VMEM)


def _maybe_pad_obs(obs, obs_rows):
    if obs.shape[1] != obs_rows:
        obs = jnp.pad(obs, ((0, 0), (0, obs_rows - obs.shape[1])))
    return obs


def qnetwork_forward(obs, packed, *, n_agents, act_dim, batch_tile=None):
    """Per-agent Q-values for a shared observation. Returns (A, B, ACT) f32.

    batch_tile=None -> gridless (everything VMEM-resident); otherwise the batch
    is tiled with weights grid-invariant and a parallel grid axis (v7x megacore).
    """
    w_all, b_all = packed["w"], packed["b"]
    obs_rows, width = packed["obs_rows"], packed["width"]
    B = obs.shape[0]
    obs = _maybe_pad_obs(obs, obs_rows)
    kernel = functools.partial(_qnet_fwd_kernel, obs_rows=obs_rows, width=width)
    out_shape = jax.ShapeDtypeStruct((B, width), jnp.float32)

    if batch_tile is None or batch_tile >= B:
        q_pad = pl.pallas_call(
            kernel, out_shape=out_shape,
            in_specs=[_VMEM_SPEC] * 3, out_specs=_VMEM_SPEC,
        )(obs, w_all, b_all)
    else:
        assert B % batch_tile == 0 and batch_tile % 8 == 0
        q_pad = pl.pallas_call(
            kernel, out_shape=out_shape,
            grid=(B // batch_tile,),
            in_specs=[pl.BlockSpec((batch_tile, obs_rows), lambda i: (i, 0)),
                      pl.BlockSpec(w_all.shape, lambda i: (0, 0)),
                      pl.BlockSpec(b_all.shape, lambda i: (0, 0))],
            out_specs=pl.BlockSpec((batch_tile, width), lambda i: (i, 0)),
            compiler_params=pltpu.CompilerParams(
                dimension_semantics=("parallel",)),
        )(obs, w_all, b_all)

    # glue: strip lane padding, expose the per-agent view
    q = q_pad[:, :n_agents * act_dim].reshape(B, n_agents, act_dim)
    return jnp.transpose(q, (1, 0, 2))


def qnetwork_act(obs, packed, *, n_agents, act_dim):
    """Greedy actions (A, B); argmax fused in-kernel (epsilon branch is host RNG)."""
    w_all, b_all = packed["w"], packed["b"]
    obs_rows, width = packed["obs_rows"], packed["width"]
    B = obs.shape[0]
    obs = _maybe_pad_obs(obs, obs_rows)
    apad = 128 * pl.cdiv(n_agents, 128)              # lane-dense action output
    kernel = functools.partial(_qnet_act_kernel, obs_rows=obs_rows, width=width,
                               n_agents=n_agents, act_dim=act_dim)
    acts_pad = pl.pallas_call(
        kernel,
        out_shape=jax.ShapeDtypeStruct((B, apad), jnp.int32),
        in_specs=[_VMEM_SPEC] * 3, out_specs=_VMEM_SPEC,
    )(obs, w_all, b_all)
    return acts_pad[:, :n_agents].T                  # (A, B)


# ----------------------------- parameter handling ----------------------------

def init_params(key, n_agents, obs_dim, hidden, act_dim):
    """Per-agent weights stored [A, in, out] (x @ W + b convention)."""
    ks = jax.random.split(key, 6)
    h1, h2 = hidden

    def u(k, shape, fan_in):
        bound = 1.0 / jnp.sqrt(jnp.float32(fan_in))
        return jax.random.uniform(k, shape, jnp.float32, -bound, bound)

    return {
        "w1": u(ks[0], (n_agents, obs_dim, h1), obs_dim),
        "b1": u(ks[1], (n_agents, 1, h1), obs_dim),
        "w2": u(ks[2], (n_agents, h1, h2), h1),
        "b2": u(ks[3], (n_agents, 1, h2), h1),
        "w3": u(ks[4], (n_agents, h2, act_dim), h2),
        "b3": u(ks[5], (n_agents, 1, act_dim), h2),
    }


def pack_params(params):
    """One-time repack (outside hot path):
       * W1 lane-stacked, W2/W3 block-diagonal inside a WIDTH-wide slab,
       * all three layers concatenated into ONE bf16 weight slab,
       * all three biases stacked into ONE (3, WIDTH) f32 array."""
    A, OBS, H1 = params["w1"].shape
    H2 = params["w2"].shape[2]
    ACT = params["w3"].shape[2]
    d1, d2, dq = A * H1, A * H2, A * ACT
    width = 128 * pl.cdiv(max(d1, d2, dq, 1), 128)   # lane-dense layer width
    obs_rows = 8 * pl.cdiv(OBS, 8)                   # sublane-aligned W2 start

    w1 = jnp.zeros((obs_rows, width), jnp.float32)
    w1 = w1.at[:OBS, :d1].set(
        jnp.transpose(params["w1"], (1, 0, 2)).reshape(OBS, d1))

    w2 = jnp.zeros((width, width), jnp.float32)
    for a in range(A):
        w2 = w2.at[a * H1:(a + 1) * H1, a * H2:(a + 1) * H2].set(params["w2"][a])

    w3 = jnp.zeros((width, width), jnp.float32)
    for a in range(A):
        w3 = w3.at[a * H2:(a + 1) * H2, a * ACT:(a + 1) * ACT].set(params["w3"][a])

    w_all = jnp.concatenate([w1, w2, w3], axis=0).astype(jnp.bfloat16)

    b_all = jnp.zeros((3, width), jnp.float32)
    b_all = b_all.at[0, :d1].set(params["b1"].reshape(d1))
    b_all = b_all.at[1, :d2].set(params["b2"].reshape(d2))
    b_all = b_all.at[2, :dq].set(params["b3"].reshape(dq))

    return {"w": w_all, "b": b_all, "obs_rows": obs_rows, "width": width}


# ----------------------------- reference --------------------------------------

def _reference(obs, p):
    """Pure-JAX per-agent reference with matching numerics (bf16 operands,
    f32 accumulation) from the UNPACKED parameters."""
    A = p["w1"].shape[0]

    def bdot(x, w):
        return jnp.einsum("abd,adh->abh",
                          x.astype(jnp.bfloat16), w.astype(jnp.bfloat16),
                          preferred_element_type=jnp.float32)

    obs_a = jnp.broadcast_to(obs[None], (A,) + obs.shape)
    h1 = jnp.maximum(bdot(obs_a, p["w1"]) + p["b1"], 0.0)
    h2 = jnp.maximum(bdot(h1, p["w2"]) + p["b2"], 0.0)
    return bdot(h2, p["w3"]) + p["b3"]


# ----------------------------- demo / check -----------------------------------

if __name__ == "__main__":
    key = jax.random.PRNGKey(0)
    k_obs, k_obs2, k_par = jax.random.split(key, 3)

    N_AGENTS = 2
    OBS_DIM = 32
    HIDDEN = (64, 64)
    ACT_DIM = 16
    B_ACT = 8        # env-step-like batch (act path)
    B_TRAIN = 256    # replay-batch-like batch (exercises batch-tiled path)

    params = init_params(k_par, N_AGENTS, OBS_DIM, HIDDEN, ACT_DIM)
    packed = pack_params(params)                     # one-time weight repack

    obs_small = jax.random.normal(k_obs, (B_ACT, OBS_DIM), jnp.float32)
    obs_large = jax.random.normal(k_obs2, (B_TRAIN, OBS_DIM), jnp.float32)

    # 1) gridless, fully VMEM-resident forward (act/_compute_loss hot path)
    q_small = jax.block_until_ready(
        qnetwork_forward(obs_small, packed, n_agents=N_AGENTS, act_dim=ACT_DIM))
    ref_small = _reference(obs_small, params)
    assert q_small.shape == (N_AGENTS, B_ACT, ACT_DIM)
    assert jnp.allclose(q_small, ref_small, atol=5e-3, rtol=5e-3), \
        "Q mismatch vs reference (gridless)"

    # 2) batch-tiled forward: parallel batch grid axis, weights grid-invariant
    q_large = jax.block_until_ready(
        qnetwork_forward(obs_large, packed, n_agents=N_AGENTS, act_dim=ACT_DIM,
                         batch_tile=128))
    ref_large = _reference(obs_large, params)
    assert q_large.shape == (N_AGENTS, B_TRAIN, ACT_DIM)
    assert jnp.allclose(q_large, ref_large, atol=5e-3, rtol=5e-3), \
        "Q mismatch vs reference (batch-tiled)"

    # 3) fused greedy-action path (argmax in-kernel, single lane-dense store)
    actions = jax.block_until_ready(
        qnetwork_act(obs_small, packed, n_agents=N_AGENTS, act_dim=ACT_DIM))
    assert actions.shape == (N_AGENTS, B_ACT)
    assert jnp.array_equal(actions, jnp.argmax(q_small, axis=-1)), \
        "fused argmax mismatch vs kernel Q"

    print("KERNEL_OK")
</pallas_src>

<mosaic_0001>
module attributes {stable_mosaic.version = 11 : i64} {
  func.func @_qnet_fwd_kernel(%arg0: memref<8x32xf32, #tpu.memory_space<vmem>>, %arg1: memref<288x128xbf16, #tpu.memory_space<vmem>>, %arg2: memref<3x128xf32, #tpu.memory_space<vmem>>, %arg3: memref<8x128xf32, #tpu.memory_space<vmem>>) attributes {dimension_semantics = [], scalar_prefetch = 0 : i64, scratch_operands = 0 : i64, tpu.core_type = #tpu.core_type<tc>} {
    %c0 = arith.constant 0 : index
    %c0_0 = arith.constant 0 : index
    %0 = vector.load %arg0[%c0, %c0_0] : memref<8x32xf32, #tpu.memory_space<vmem>>, vector<8x32xf32>
    %c0_1 = arith.constant 0 : index
    %c0_2 = arith.constant 0 : index
    %1 = vector.load %arg1[%c0_1, %c0_2] : memref<288x128xbf16, #tpu.memory_space<vmem>>, vector<32x128xbf16>
    %c32 = arith.constant 32 : index
    %c0_3 = arith.constant 0 : index
    %2 = vector.load %arg1[%c32, %c0_3] : memref<288x128xbf16, #tpu.memory_space<vmem>>, vector<128x128xbf16>
    %c160 = arith.constant 160 : index
    %c0_4 = arith.constant 0 : index
    %3 = vector.load %arg1[%c160, %c0_4] : memref<288x128xbf16, #tpu.memory_space<vmem>>, vector<128x128xbf16>
    %c0_5 = arith.constant 0 : index
    %c0_6 = arith.constant 0 : index
    %4 = vector.load %arg2[%c0_5, %c0_6] : memref<3x128xf32, #tpu.memory_space<vmem>>, vector<1x128xf32>
    %c1 = arith.constant 1 : index
    %c0_7 = arith.constant 0 : index
    %5 = vector.load %arg2[%c1, %c0_7] : memref<3x128xf32, #tpu.memory_space<vmem>>, vector<1x128xf32>
    %c2 = arith.constant 2 : index
    %c0_8 = arith.constant 0 : index
    %6 = vector.load %arg2[%c2, %c0_8] : memref<3x128xf32, #tpu.memory_space<vmem>>, vector<1x128xf32>
    %7 = arith.truncf %0 : vector<8x32xf32> to vector<8x32xbf16>
    %cst = arith.constant dense<0.000000e+00> : vector<8x128xf32>
    %8 = tpu.matmul %7, %1, %cst {dimension_numbers = #tpu.dot_dimension_numbers<[1], [0], [0], [1], [0, 0, 1, 1], [], []>} : vector<8x32xbf16>, vector<32x128xbf16>, vector<8x128xf32> -> vector<8x128xf32>
    %9 = vector.broadcast %4 : vector<1x128xf32> to vector<8x128xf32>
    %10 = arith.addf %8, %9 : vector<8x128xf32>
    %cst_9 = arith.constant 0.000000e+00 : f32
    %11 = vector.broadcast %cst_9 : f32 to vector<8x128xf32>
    %12 = arith.maximumf %10, %11 : vector<8x128xf32>
    %13 = arith.truncf %12 : vector<8x128xf32> to vector<8x128xbf16>
    %cst_10 = arith.constant dense<0.000000e+00> : vector<8x128xf32>
    %14 = tpu.matmul %13, %2, %cst_10 {dimension_numbers = #tpu.dot_dimension_numbers<[1], [0], [0], [1], [0, 0, 1, 1], [], []>} : vector<8x128xbf16>, vector<128x128xbf16>, vector<8x128xf32> -> vector<8x128xf32>
    %15 = vector.broadcast %5 : vector<1x128xf32> to vector<8x128xf32>
    %16 = arith.addf %14, %15 : vector<8x128xf32>
    %cst_11 = arith.constant 0.000000e+00 : f32
    %17 = vector.broadcast %cst_11 : f32 to vector<8x128xf32>
    %18 = arith.maximumf %16, %17 : vector<8x128xf32>
    %19 = arith.truncf %18 : vector<8x128xf32> to vector<8x128xbf16>
    %cst_12 = arith.constant dense<0.000000e+00> : vector<8x128xf32>
    %20 = tpu.matmul %19, %3, %cst_12 {dimension_numbers = #tpu.dot_dimension_numbers<[1], [0], [0], [1], [0, 0, 1, 1], [], []>} : vector<8x128xbf16>, vector<128x128xbf16>, vector<8x128xf32> -> vector<8x128xf32>
    %21 = vector.broadcast %6 : vector<1x128xf32> to vector<8x128xf32>
    %22 = arith.addf %20, %21 : vector<8x128xf32>
    %c0_13 = arith.constant 0 : index
    %c0_14 = arith.constant 0 : index
    %23 = vector.load %arg3[%c0_13, %c0_14] : memref<8x128xf32, #tpu.memory_space<vmem>>, vector<8x128xf32>
    tpu.vector_store %arg3[%c0_13, %c0_14], %22 {strides = array<i32>} : memref<8x128xf32, #tpu.memory_space<vmem>>, vector<8x128xf32>,
    return
  }
}

</mosaic_0001>

<bundles_post_ra>
// kernel: tpu_custom_call.1
= control target key start
LH: loop header
LB: loop body
LE: loop exit
PB: predicated region body
PF: predicated region fallthrough
CT: control target
= control target key end

     0   :  { %8 = vsyncpa [#allocation3], 0  ;;  %s626_s0 = inlined_call_operand.hbm [shape: f32[8,32], index: 0, kind: input, shape index: {}]   ;;  %s627_s1 = inlined_call_operand.hbm [shape: bf16[288,128], index: 1, kind: input, shape index: {}]   ;;  %s628_s2 = inlined_call_operand.hbm [shape: f32[3,128], index: 2, kind: input, shape index: {}]   ;;  %s629_s3 = inlined_call_operand.hbm [shape: f32[8,128], index: 3, kind: output, shape index: {}]  }
   0x1   :  { %9 = vsyncpa [#allocation6], 0 }
   0x2   :  { %10 = vsyncpa [#allocation4], 0  ;;  %s562_s12 = smov [#allocation5]  }
   0x3   :  { %s26_s13 = sshll.u32 %s562_s12, 4  ;;  %s27_s13 = int_to_ptr.vmem [resolvable:$true] %s26_s13 }
   0x4   :  { %s484_s14 = scalar_lea.vmem %s27_s13, 2304  ;;  %p489_p1 = scmp.lt.s32.totalorder %s27_s13, %s27_s13 }
   0x5   :  { %p485_p0 = scmp.ne.s32.totalorder %s27_s13, %s484_s14  ;;  %p490_p2 = scmp.lt.s32.totalorder %s484_s14, %s484_s14 }
   0x7   :  { %p491_p3 = por %p490_p2, %p489_p1 }
   0x9   :  { %p492_p4 = pnand %p491_p3, %p485_p0 }
   0xb   :  { %495 = shalt.err (!%p492_p4)
}
   0xc   :  { %s563_s15 = smov 64   ;;  %s564_s16 = smov 4  }
   0xd   :  { %32 = dma.hbm_to_vmem [thread:$0]  %s627_s1, 2304, %s27_s13, [#allocation6], %s563_s15, %s563_s15, %s564_s16  }
   0xe   :  { %s565_s19 = smov [#allocation2]   ;;  %s566_s21 = smov [#allocation7]  }
   0xf   :  { %s17_s20 = sshll.u32 %s565_s19, 4  ;;  %s39_s22 = sshll.u32 %s566_s21, 4  ;;  %s18_s20 = int_to_ptr.vmem [resolvable:$true] %s17_s20  ;;  %s40_s22 = int_to_ptr.vmem [resolvable:$true] %s39_s22 }
  0x10   :  { %s504_s23 = scalar_lea.vmem %s18_s20, 128  ;;  %p509_p6 = scmp.lt.s32.totalorder %s18_s20, %s18_s20 }
  0x11   :  { %p505_p5 = scmp.ne.s32.totalorder %s18_s20, %s504_s23  ;;  %p510_p7 = scmp.lt.s32.totalorder %s504_s23, %s504_s23 }
  0x13   :  { %p511_p8 = por %p510_p7, %p509_p6 }
  0x15   :  { %p512_p9 = pnand %p511_p8, %p505_p5 }
  0x17   :  { %515 = shalt.err (!%p512_p9)
}
  0x18   :  { %20 = dma.hbm_to_vmem [thread:$0]  %s626_s0, 128, %s18_s20, [#allocation3]  }
  0x19   :  { %s524_s26 = scalar_lea.vmem %s40_s22, 64  ;;  %p529_p11 = scmp.lt.s32.totalorder %s40_s22, %s40_s22 }
  0x1a   :  { %p525_p10 = scmp.ne.s32.totalorder %s40_s22, %s524_s26  ;;  %p530_p12 = scmp.lt.s32.totalorder %s524_s26, %s524_s26 }
  0x1c   :  { %p531_p13 = por %p530_p12, %p529_p11 }
  0x1e   :  { %p532_p0 = pnand %p531_p13, %p525_p10 }
  0x20   :  { %535 = shalt.err (!%p532_p0)
}
  0x21   :  { %42 = dma.hbm_to_vmem [thread:$0]  %s628_s2, 64, %s40_s22, [#allocation6]  }
  0x22   :  { %556 = dma.done.wait [#allocation3], 128  }
  0x23   :  { %557 = vsyncadd [#allocation3], 4294967168 }
  0x24   :  { %558 = dma.done.wait [#allocation6], 2368  }
  0x25   :  { %559 = vsyncadd [#allocation6], 4294964928  ;;  %v567_v0 = vmov 0.0   ;;  %vm568_vm0 = vmmov 0   ;;  %v458_v1 = vld [vmem:[#allocation5 + $0x8] sm:$0xff]   ;;  %v459_v2 = vld [vmem:[#allocation5] sm:$0xff]  }
  0x26   :  { %402 = vmatprep.subr.bf16.mxu0 %v567_v0  ;;  %406 = vmatprep.mubr.msk.bf16.mxu0 %vm568_vm0, %v567_v0  ;;  %v53_v3 = vld [vmem:[#allocation2] sm:$0xff]  ;;  %v460_v4 = vld [vmem:[#allocation5 + $0x48] sm:$0xff]   ;;  %v461_v6 = vld [vmem:[#allocation5 + $0x40] sm:$0xff]   ;;  %vm110_vm1 = vcmask 261120   ;;  %s569_s0 = smov [#allocation8]  }
  0x27   :  { %410 = vmatprep.subr.bf16.mxu1 %v567_v0  ;;  %426 = vmatprep.mubr.msk.bf16.mxu1 %vm568_vm0, %v567_v0  ;;  %v93_v5 = vpack.c.bf16 %v53_v3, %v53_v3  ;;  %v462_v7 = vld [vmem:[#allocation5 + $0x38] sm:$0xff]   ;;  %v463_v8 = vld [vmem:[#allocation5 + $0x30] sm:$0xff]   ;;  %v464_v9 = vld [vmem:[#allocation5 + $0x28] sm:$0xff]   ;;  %s349_s2 = sshll.u32 %s569_s0, 4  ;;  %s350_s2 = int_to_ptr.vmem [resolvable:$true] %s349_s2 }
  0x28   :  { %403 = vmatpush3.bf16.msra.mxu0 %v458_v1  ;;  %411 = vmatpush3.bf16.msra.mxu1 %v460_v4  ;;  %v465_v10 = vld [vmem:[#allocation5 + $0x20] sm:$0xff]   ;;  %v466_v11 = vld [vmem:[#allocation5 + $0x18] sm:$0xff]   ;;  %v467_v12 = vld [vmem:[#allocation5 + $0x10] sm:$0xff]   ;;  %s536_s28 = scalar_lea.vmem %s350_s2, 128  ;;  %p541_p2 = scmp.lt.s32.totalorder %s350_s2, %s350_s2 }
  0x29   :  { %404 = vmatprep.subr.bf16.mxu0 %v567_v0  ;;  %412 = vmatprep.subr.bf16.mxu1 %v567_v0  ;;  %v468_v13 = vld [vmem:[#allocation5 + $0x88] sm:$0xff]   ;;  %v469_v14 = vld [vmem:[#allocation5 + $0x80] sm:$0xff]   ;;  %v470_v15 = vld [vmem:[#allocation5 + $0x78] sm:$0xff]   ;;  %p537_p1 = scmp.ne.s32.totalorder %s350_s2, %s536_s28  ;;  %p542_p3 = scmp.lt.s32.totalorder %s536_s28, %s536_s28 }
  0x2a   :  { %v471_v16 = vld [vmem:[#allocation5 + $0x70] sm:$0xff]   ;;  %v472_v17 = vld [vmem:[#allocation5 + $0x68] sm:$0xff]   ;;  %v473_v18 = vld [vmem:[#allocation5 + $0x60] sm:$0xff]  }
  0x2b   :  { %v359_v19 = vld [vmem:[#allocation7] ss:$0 sm:$0xff]  ;;  %v474_v27 = vld [vmem:[#allocation5 + $0x58] sm:$0xff]   ;;  %v363_v29 = vld [vmem:[#allocation7 + $0x1] ss:$0 sm:$0xff]  ;;  %p543_p4 = por %p542_p3, %p541_p2 }
  0x2c   :  { %405 = vmatpush3.bf16.msra.mxu0 %v459_v2  ;;  %413 = vmatpush3.bf16.msra.mxu1 %v461_v6  ;;  %v475_v28 = vld [vmem:[#allocation5 + $0x50] sm:$0xff]  }
  0x2d   :  { %430 = vmatprep.subr.bf16.mxu0 %v567_v0  ;;  %414 = vmatprep.subr.bf16.mxu1 %v567_v0  ;;  %v372_v37 = vld [vmem:[#allocation7 + $0x2] ss:$0 sm:$0xff]  ;;  %p544_p5 = pnand %p543_p4, %p537_p1 }
  0x2f   :  { %407 = vmatmul.mubr.msk.bf16.vlgmr.msra.gmra.mxu0 %vm110_vm1, %v93_v5 }
  0x30   :  { %446 = vmatprep.mubr.msk.bf16.mxu0 %vm568_vm0, %v567_v0  ;;  %415 = vmatpush3.bf16.msra.mxu1 %v462_v7 }
  0x31   :  { %416 = vmatprep.subr.bf16.mxu1 %v567_v0  ;;  %431 = vmatpush3.bf16.msra.mxu0 %v468_v13 }
  0x32   :  { %432 = vmatprep.subr.bf16.mxu0 %v567_v0 }
  0x34   :  { %417 = vmatpush3.bf16.msra.mxu1 %v463_v8 }
  0x35   :  { %418 = vmatprep.subr.bf16.mxu1 %v567_v0  ;;  %433 = vmatpush3.bf16.msra.mxu0 %v469_v14 }
  0x36   :  { %434 = vmatprep.subr.bf16.mxu0 %v567_v0 }
  0x38   :  { %419 = vmatpush3.bf16.msra.mxu1 %v464_v9 }
  0x39   :  { %420 = vmatprep.subr.bf16.mxu1 %v567_v0  ;;  %435 = vmatpush3.bf16.msra.mxu0 %v470_v15 }
  0x3a   :  { %436 = vmatprep.subr.bf16.mxu0 %v567_v0 }
  0x3c   :  { %421 = vmatpush3.bf16.msra.mxu1 %v465_v10 }
  0x3d   :  { %422 = vmatprep.subr.bf16.mxu1 %v567_v0  ;;  %437 = vmatpush3.bf16.msra.mxu0 %v471_v16 }
  0x3e   :  { %438 = vmatprep.subr.bf16.mxu0 %v567_v0 }
  0x40   :  { %423 = vmatpush3.bf16.msra.mxu1 %v466_v11 }
  0x41   :  { %424 = vmatprep.subr.bf16.mxu1 %v567_v0  ;;  %439 = vmatpush3.bf16.msra.mxu0 %v472_v17 }
  0x42   :  { %440 = vmatprep.subr.bf16.mxu0 %v567_v0 }
  0x44   :  { %425 = vmatpush3.bf16.msra.mxu1 %v467_v12 }
  0x45   :  { %441 = vmatpush3.bf16.msra.mxu0 %v473_v18 }
  0x46   :  { %442 = vmatprep.subr.bf16.mxu0 %v567_v0 }
  0x49   :  { %443 = vmatpush3.bf16.msra.mxu0 %v474_v27 }
  0x4a   :  { %444 = vmatprep.subr.bf16.mxu0 %v567_v0 }
  0x4d   :  { %445 = vmatpush3.bf16.msra.mxu0 %v475_v28 }
  0xef   :  { %v148_v20 = vpop.f32.mrf.mxu0 }
  0xf0   :  { %v149_v21 = vadd.f32 %v359_v19, %v148_v20 }
  0xf1   :  { %v408_v22 = vpop.f32.mrf.mxu0 }
  0xf2   :  { %v154_v23 = vmax.f32 %v149_v21, 0.0 }
  0xf3   :  { %v151_v24 = vpop.f32.mrf.mxu0 }
  0xf4   :  { %v155_v25 = vpack.c.bf16 %v154_v23, %v154_v23 }
  0xf5   :  { %v409_v26 = vpop.f32.mrf.mxu0 }
  0xf6   :  { %427 = vmatmul.mubr.bf16.vlgmr.msra.gmra.mxu1 %v155_v25 }
 0x1b6   :  { %v242_v30 = vpop.f32.mrf.mxu1 }
 0x1b7   :  { %v243_v31 = vadd.f32 %v363_v29, %v242_v30 }
 0x1b8   :  { %v428_v32 = vpop.f32.mrf.mxu1 }
 0x1b9   :  { %v248_v33 = vmax.f32 %v243_v31, 0.0 }
 0x1ba   :  { %v245_v34 = vpop.f32.mrf.mxu1 }
 0x1bb   :  { %v249_v35 = vpack.c.bf16 %v248_v33, %v248_v33 }
 0x1bc   :  { %v429_v36 = vpop.f32.mrf.mxu1 }
 0x1bd   :  { %447 = vmatmul.mubr.bf16.vlgmr.msra.gmra.mxu0 %v249_v35 }
 0x27d   :  { %v336_v38 = vpop.f32.mrf.mxu0 }
 0x27e   :  { %v337_v39 = vadd.f32 %v372_v37, %v336_v38 }
 0x27f   :  { %v448_v40 = vpop.f32.mrf.mxu0 }
 0x280   :  { %342 = vst [vmem:[#allocation8] sm:$0xff] %v337_v39 }
 0x281   :  { %v339_v41 = vpop.f32.mrf.mxu0 }
 0x282   :  { %547 = shalt.err (!%p544_p5)
}
 0x283   :  { %352 = dma.vmem_to_hbm [thread:$0]  %s350_s2, 128, %s629_s3, [#allocation4]   ;;  %v449_v42 = vpop.f32.mrf.mxu0 }
 0x284   :  { %560 = dma.done.wait [#allocation4], 128  }
 0x285   :  { %561 = vsyncadd [#allocation4], 4294967168 }
 0x286   :  { %356 = vsyncpa [#allocation3], 1 }
 0x287   :  { %357 = vsyncpa [#allocation6], 1 }
 0x288   :  { %358 = vsyncpa [#allocation4], 1 }

</bundles_post_ra>
